<compile_context>
chip_gen: v7x
topology: tpu7x:2x2x1
jax: 0.10.0
libtpu: 0.0.40
codegen_flags: <defaults>
</compile_context>

<pallas_src>
import functools

import jax
import jax.numpy as jnp
from jax import lax
from jax.experimental import pallas as pl
from jax.experimental.pallas import tpu as pltpu


# ----------------------------------------------------------------------------
# Fused kernel: optional depthwise 3x3 box sum (zero "same" padding) followed by
# a per-plane affine  y = sum9(x) * scale + bias   (1/9 pre-folded into scale).
#
# Block layout: (P planes, H*W) -- each image plane is one lane-dense row.
# Horizontal neighbours are lane shifts of +-1, vertical neighbours are lane
# shifts of +-W; wrap-around lanes are zeroed to reproduce zero padding.
# ----------------------------------------------------------------------------
def _fused_kernel(x_ref, scale_ref, bias_ref, o_ref, *, H, W, do_blur):
    x = x_ref[...].astype(jnp.float32)                      # (P, H*W)
    P, HW = x.shape

    if do_blur:
        col = lax.broadcasted_iota(jnp.int32, (P, HW), 1)   # flat pixel index
        w_idx = col % W                                      # column within a row

        # Horizontal 3-tap sum with zero padding at w = 0 / W-1
        # (XLU rolls are a separate slot from the VPU selects/adds).
        left = jnp.where(w_idx == 0, 0.0, pltpu.roll(x, shift=1, axis=1))
        right = jnp.where(w_idx == W - 1, 0.0,
                          pltpu.roll(x, shift=HW - 1, axis=1))
        hsum = x + left + right

        # Vertical 3-tap sum with zero padding at h = 0 / H-1.
        # h==0   <=> col <  W        h==H-1 <=> col >= HW-W   (no integer divide)
        up = jnp.where(col < W, 0.0, pltpu.roll(hsum, shift=W, axis=1))
        down = jnp.where(col >= HW - W, 0.0,
                         pltpu.roll(hsum, shift=HW - W, axis=1))
        x = hsum + up + down                                 # unnormalized 9-sum

    s = scale_ref[...].astype(jnp.float32)                   # (P, 1) -> lane broadcast
    b = bias_ref[...].astype(jnp.float32)
    o_ref[...] = (x * s + b).astype(o_ref.dtype)


def _choose_plane_batch(nc, plane_bytes, budget_bytes=4 << 20):
    """Returns (P, padded_nc).  If everything fits the per-buffer VMEM budget,
    use a single full-extent block (no sublane-divisibility requirement).
    Otherwise pick P as a multiple of 8 (legal sublane block) and pad nc up."""
    if nc * plane_bytes <= budget_bytes:
        return nc, nc
    cap = max(8, (budget_bytes // max(plane_bytes, 1)) // 8 * 8)
    padded = pl.cdiv(nc, cap) * cap
    return cap, padded


def _run_fused(x, scale_planes, bias_planes, *, do_blur):
    """x: (N, C, H, W); scale_planes/bias_planes: (N*C, 1) per-plane affine params.
    When do_blur=True the caller must fold the 1/9 blur normalization into scale."""
    N, C, H, W = x.shape
    NC, HW = N * C, H * W
    x2 = x.reshape(NC, HW)                       # free reshape (collapses trailing dims)

    P, NCp = _choose_plane_batch(NC, HW * x2.dtype.itemsize)
    if NCp != NC:                                # pad plane axis to a multiple of P
        pad = NCp - NC
        x2 = jnp.pad(x2, ((0, pad), (0, 0)))
        scale_planes = jnp.pad(scale_planes, ((0, pad), (0, 0)))
        bias_planes = jnp.pad(bias_planes, ((0, pad), (0, 0)))

    out = pl.pallas_call(
        functools.partial(_fused_kernel, H=H, W=W, do_blur=do_blur),
        out_shape=jax.ShapeDtypeStruct((NCp, HW), x.dtype),
        grid_spec=pltpu.PrefetchScalarGridSpec(
            num_scalar_prefetch=0,
            grid=(NCp // P,),
            in_specs=[
                pl.BlockSpec((P, HW), lambda i: (i, 0)),
                pl.BlockSpec((P, 1), lambda i: (i, 0)),
                pl.BlockSpec((P, 1), lambda i: (i, 0)),
            ],
            out_specs=pl.BlockSpec((P, HW), lambda i: (i, 0)),
        ),
        compiler_params=pltpu.CompilerParams(
            dimension_semantics=("parallel",),
            vmem_limit_bytes=32 * 1024 * 1024,   # safe on v5e/v6e/v7x
        ),
    )(x2, scale_planes, bias_planes)

    if NCp != NC:
        out = out[:NC]
    return out.reshape(N, C, H, W)


# ----------------------------------------------------------------------------
# Filters (each also works standalone via the same fused kernel).
# ----------------------------------------------------------------------------
class BoxBlur3x3:
    """Depthwise 3x3 convolution with uniform 1/9 weights, zero 'same' padding."""

    def __call__(self, x):
        NC = x.shape[0] * x.shape[1]
        scale = jnp.full((NC, 1), 1.0 / 9.0, jnp.float32)   # fold the 1/9 here
        bias = jnp.zeros((NC, 1), jnp.float32)
        return _run_fused(x, scale, bias, do_blur=True)

    def __str__(self):
        return "BoxBlur3x3()"


class ChannelAffine:
    """y[n, c, h, w] = x[n, c, h, w] * scale[c] + bias[c]."""

    def __init__(self, scale, bias):
        self.scale = jnp.asarray(scale, jnp.float32)
        self.bias = jnp.asarray(bias, jnp.float32)

    def per_plane(self, N):
        C = self.scale.shape[0]
        return (jnp.tile(self.scale, N).reshape(N * C, 1),
                jnp.tile(self.bias, N).reshape(N * C, 1))

    def __call__(self, x):
        s, b = self.per_plane(x.shape[0])
        return _run_fused(x, s, b, do_blur=False)

    def __str__(self):
        return "ChannelAffine()"


# ----------------------------------------------------------------------------
# SequenceFilters: same forward semantics as the PyTorch module (apply filters
# sequentially), with adjacent BoxBlur3x3 -> ChannelAffine pairs fused into a
# single pallas_call (identical numerics, half the HBM traffic).
# ----------------------------------------------------------------------------
class SequenceFilters:

    def __init__(self, *filters):
        self.filters_name = [str(f) for f in filters]
        self.filters = list(filters)

    def forward(self, img):
        i, n = 0, len(self.filters)
        while i < n:
            f = self.filters[i]
            if (isinstance(f, BoxBlur3x3) and i + 1 < n
                    and isinstance(self.filters[i + 1], ChannelAffine)):
                aff = self.filters[i + 1]
                s, b = aff.per_plane(img.shape[0])
                # Fold the blur's 1/9 into the affine scale (host-side, tiny array).
                img = _run_fused(img, s * (1.0 / 9.0), b, do_blur=True)
                i += 2
            else:
                img = f(img)
                i += 1
        return img

    __call__ = forward

    def __repr__(self):
        return str((self.__class__.__name__, *self.filters_name))

    def __str__(self):
        return "<-".join(reversed(self.filters_name))


# ----------------------------------------------------------------------------
# Pure-JAX reference for correctness check.
# ----------------------------------------------------------------------------
def _reference(x, scale, bias):
    N, C, H, W = x.shape
    xpad = jnp.pad(x.reshape(N * C, H, W), ((0, 0), (1, 1), (1, 1)))
    acc = jnp.zeros((N * C, H, W), jnp.float32)
    for di in range(3):
        for dj in range(3):
            acc = acc + xpad[:, di:di + H, dj:dj + W]
    blurred = (acc / 9.0).reshape(N, C, H, W)
    return blurred * scale[None, :, None, None] + bias[None, :, None, None]


if __name__ == "__main__":
    key = jax.random.PRNGKey(0)
    N, C, H, W = 2, 4, 16, 16
    x = jax.random.normal(key, (N, C, H, W), dtype=jnp.float32)

    # Deterministic per-channel parameters.
    scale = 1.0 + 0.1 * jnp.arange(C, dtype=jnp.float32)
    bias = 0.01 * jnp.arange(C, dtype=jnp.float32)

    model = SequenceFilters(BoxBlur3x3(), ChannelAffine(scale, bias))
    out = jax.block_until_ready(model(x))

    ref = _reference(x, scale, bias)
    assert out.shape == (N, C, H, W) and out.dtype == x.dtype
    assert jnp.allclose(out, ref, atol=1e-5, rtol=1e-5)

    # Also exercise the unfused paths (semantics of the generic container).
    blur_only = jax.block_until_ready(BoxBlur3x3()(x))
    blur_ref = _reference(x, jnp.ones((C,), jnp.float32), jnp.zeros((C,), jnp.float32))
    assert jnp.allclose(blur_only, blur_ref, atol=1e-5, rtol=1e-5)

    aff_only = jax.block_until_ready(ChannelAffine(scale, bias)(x))
    aff_ref = x * scale[None, :, None, None] + bias[None, :, None, None]
    assert jnp.allclose(aff_only, aff_ref, atol=1e-5, rtol=1e-5)

    print("KERNEL_OK")
</pallas_src>

<mosaic_0001>
module attributes {stable_mosaic.version = 11 : i64} {
  func.func @_fused_kernel(%arg0: i32, %arg1: memref<8x256xf32, #tpu.memory_space<vmem>>, %arg2: memref<8x1xf32, #tpu.memory_space<vmem>>, %arg3: memref<8x1xf32, #tpu.memory_space<vmem>>, %arg4: memref<8x256xf32, #tpu.memory_space<vmem>>) attributes {dimension_semantics = [#tpu.dimension_semantics<parallel>], iteration_bounds = array<i64: 1>, scalar_prefetch = 0 : i64, scratch_operands = 0 : i64, tpu.core_type = #tpu.core_type<tc>, window_params = [{transform_indices = @transform_0, window_bounds = array<i64: 8, 256>}, {transform_indices = @transform_1, window_bounds = array<i64: 8, 1>}, {transform_indices = @transform_2, window_bounds = array<i64: 8, 1>}, {transform_indices = @transform_3, window_bounds = array<i64: 8, 256>}]} {
    %c0 = arith.constant 0 : index
    %c0_0 = arith.constant 0 : index
    %0 = vector.load %arg1[%c0, %c0_0] : memref<8x256xf32, #tpu.memory_space<vmem>>, vector<8x256xf32>
    %1 = tpu.iota {dimensions = array<i32: 1>} : vector<8x256xi32>
    %c16_i32 = arith.constant 16 : i32
    %c0_i32 = arith.constant 0 : i32
    %2 = arith.cmpi eq, %c16_i32, %c0_i32 : i32
    %c1_i32 = arith.constant 1 : i32
    %3 = arith.select %2, %c1_i32, %c16_i32 : i32
    %4 = vector.broadcast %3 : i32 to vector<8x256xi32>
    %5 = arith.remsi %1, %4 : vector<8x256xi32>
    %c0_i32_1 = arith.constant 0 : i32
    %6 = vector.broadcast %c0_i32_1 : i32 to vector<8x256xi32>
    %7 = arith.cmpi ne, %5, %6 : vector<8x256xi32>
    %c0_i32_2 = arith.constant 0 : i32
    %8 = vector.broadcast %c0_i32_2 : i32 to vector<8x256xi32>
    %9 = arith.cmpi slt, %5, %8 : vector<8x256xi32>
    %c0_i32_3 = arith.constant 0 : i32
    %10 = arith.cmpi slt, %3, %c0_i32_3 : i32
    %11 = vector.broadcast %10 : i1 to vector<8x256xi1>
    %12 = vector.broadcast %11 : vector<8x256xi1> to vector<8x256xi1>
    %13 = arith.xori %9, %12 : vector<8x256xi1>
    %14 = arith.andi %13, %7 : vector<8x256xi1>
    %15 = vector.broadcast %3 : i32 to vector<8x256xi32>
    %16 = arith.addi %5, %15 : vector<8x256xi32>
    %17 = arith.select %14, %16, %5 : vector<8x256xi1>, vector<8x256xi32>
    %c0_i32_4 = arith.constant 0 : i32
    %18 = vector.broadcast %c0_i32_4 : i32 to vector<8x256xi32>
    %19 = arith.cmpi eq, %17, %18 : vector<8x256xi32>
    %c1_i32_5 = arith.constant 1 : i32
    %20 = tpu.dynamic_rotate %0 by %c1_i32_5 dim 1 : vector<8x256xf32>, i32 -> vector<8x256xf32>
    %cst = arith.constant 0.000000e+00 : f32
    %21 = vector.broadcast %cst : f32 to vector<8x256xf32>
    %22 = arith.select %19, %21, %20 : vector<8x256xi1>, vector<8x256xf32>
    %c15_i32 = arith.constant 15 : i32
    %23 = vector.broadcast %c15_i32 : i32 to vector<8x256xi32>
    %24 = arith.cmpi eq, %17, %23 : vector<8x256xi32>
    %c255_i32 = arith.constant 255 : i32
    %25 = tpu.dynamic_rotate %0 by %c255_i32 dim 1 : vector<8x256xf32>, i32 -> vector<8x256xf32>
    %cst_6 = arith.constant 0.000000e+00 : f32
    %26 = vector.broadcast %cst_6 : f32 to vector<8x256xf32>
    %27 = arith.select %24, %26, %25 : vector<8x256xi1>, vector<8x256xf32>
    %28 = arith.addf %0, %22 : vector<8x256xf32>
    %29 = arith.addf %28, %27 : vector<8x256xf32>
    %c16_i32_7 = arith.constant 16 : i32
    %30 = vector.broadcast %c16_i32_7 : i32 to vector<8x256xi32>
    %31 = arith.cmpi slt, %1, %30 : vector<8x256xi32>
    %c16_i32_8 = arith.constant 16 : i32
    %32 = tpu.dynamic_rotate %29 by %c16_i32_8 dim 1 : vector<8x256xf32>, i32 -> vector<8x256xf32>
    %cst_9 = arith.constant 0.000000e+00 : f32
    %33 = vector.broadcast %cst_9 : f32 to vector<8x256xf32>
    %34 = arith.select %31, %33, %32 : vector<8x256xi1>, vector<8x256xf32>
    %c240_i32 = arith.constant 240 : i32
    %35 = vector.broadcast %c240_i32 : i32 to vector<8x256xi32>
    %36 = arith.cmpi sge, %1, %35 : vector<8x256xi32>
    %c240_i32_10 = arith.constant 240 : i32
    %37 = tpu.dynamic_rotate %29 by %c240_i32_10 dim 1 : vector<8x256xf32>, i32 -> vector<8x256xf32>
    %cst_11 = arith.constant 0.000000e+00 : f32
    %38 = vector.broadcast %cst_11 : f32 to vector<8x256xf32>
    %39 = arith.select %36, %38, %37 : vector<8x256xi1>, vector<8x256xf32>
    %40 = arith.addf %29, %34 : vector<8x256xf32>
    %41 = arith.addf %40, %39 : vector<8x256xf32>
    %c0_12 = arith.constant 0 : index
    %c0_13 = arith.constant 0 : index
    %42 = vector.load %arg2[%c0_12, %c0_13] : memref<8x1xf32, #tpu.memory_space<vmem>>, vector<8x1xf32>
    %c0_14 = arith.constant 0 : index
    %c0_15 = arith.constant 0 : index
    %43 = vector.load %arg3[%c0_14, %c0_15] : memref<8x1xf32, #tpu.memory_space<vmem>>, vector<8x1xf32>
    %44 = vector.broadcast %42 : vector<8x1xf32> to vector<8x256xf32>
    %45 = arith.mulf %41, %44 : vector<8x256xf32>
    %46 = vector.broadcast %43 : vector<8x1xf32> to vector<8x256xf32>
    %47 = arith.addf %45, %46 : vector<8x256xf32>
    %c0_16 = arith.constant 0 : index
    %c0_17 = arith.constant 0 : index
    %48 = vector.load %arg4[%c0_16, %c0_17] : memref<8x256xf32, #tpu.memory_space<vmem>>, vector<8x256xf32>
    tpu.vector_store %arg4[%c0_16, %c0_17], %47 {strides = array<i32>} : memref<8x256xf32, #tpu.memory_space<vmem>>, vector<8x256xf32>,
    return
  }
  func.func @transform_0(%arg0: i32) -> (i32, i32) {
    %c0_i32 = arith.constant 0 : i32
    %c0_i32_0 = arith.constant 0 : i32
    return %arg0, %c0_i32 : i32, i32
  }
  func.func @transform_1(%arg0: i32) -> (i32, i32) {
    %c0_i32 = arith.constant 0 : i32
    %c0_i32_0 = arith.constant 0 : i32
    return %arg0, %c0_i32 : i32, i32
  }
  func.func @transform_2(%arg0: i32) -> (i32, i32) {
    %c0_i32 = arith.constant 0 : i32
    %c0_i32_0 = arith.constant 0 : i32
    return %arg0, %c0_i32 : i32, i32
  }
  func.func @transform_3(%arg0: i32) -> (i32, i32) {
    %c0_i32 = arith.constant 0 : i32
    %c0_i32_0 = arith.constant 0 : i32
    return %arg0, %c0_i32 : i32, i32
  }
}

</mosaic_0001>

<bundles_post_ra>
// kernel: tpu_custom_call.1
= control target key start
LH: loop header
LB: loop body
LE: loop exit
PB: predicated region body
PF: predicated region fallthrough
CT: control target
= control target key end

     0   :  { %s158_s14 = smov 127   ;;  %s159_s15 = smov 1   ;;  %s208_s0 = inlined_call_operand.vmem [shape: f32[8,256], index: 0, kind: input, shape index: {}]   ;;  %s209_s1 = inlined_call_operand.vmem [shape: f32[8,1], index: 1, kind: input, shape index: {}]   ;;  %s210_s2 = inlined_call_operand.vmem [shape: f32[8,1], index: 2, kind: input, shape index: {}]   ;;  %s211_s3 = inlined_call_operand.hbm [shape: f32[8,256], index: 3, kind: output, shape index: {}]  }
   0x1   :  { %v15_v0 = vld [vmem:[%s208_s0] sm:$0xff] }
   0x2   :  { %57 = vrot.lane.b32.xlu1 %v15_v0, %s158_s14  ;;  %46 = vrot.lane.b32.xlu0 %v15_v0, %s159_s15 }
   0x3   :  { %8 = vsyncpa [#allocation3], 0  ;;  %v16_v1 = vld [vmem:[%s208_s0 + $0x8] sm:$0xff]  ;;  %v160_v2 = vmov 0   ;;  %v95_v3 = vld [vmem:[%s209_s1] sm:$0xff]  ;;  %v17_v5 = vlaneseq  ;;  %s161_s0 = smov 16  }
   0x4   :  { %133 = vset.pattern.permute.xlu0 %v160_v2  ;;  %v96_v4 = vld [vmem:[%s210_s2] sm:$0xff]  ;;  %s162_s1 = smov 112   ;;  %s163_s2 = smov [#allocation2]  }
   0x5   :  { %v18_v6 = vand.u32 127, %v17_v5  ;;  %s119_s22 = sshll.u32 %s163_s2, 4  ;;  %s120_s22 = int_to_ptr.vmem [resolvable:$true] %s119_s22 }
   0x6   :  { %59 = vrot.lane.b32.xlu1 %v16_v1, %s158_s14  ;;  %48 = vrot.lane.b32.xlu0 %v16_v1, %s159_s15  ;;  %s134_s23 = scalar_lea.vmem %s120_s22, 256  ;;  %p139_p1 = scmp.lt.s32.totalorder %s120_s22, %s120_s22 }
   0x7   :  { %v19_v7 = vadd.s32 128, %v18_v6  ;;  %v24_v8 = vand.u32 15, %v18_v6  ;;  %vm61_vm0 = vcmp.lt.s32.totalorder %v18_v6, 127  ;;  %vm50_vm1 = vcmp.lt.s32.totalorder %v18_v6, 1  ;;  %p135_p0 = scmp.ne.s32.totalorder %s120_s22, %s134_s23  ;;  %p140_p2 = scmp.lt.s32.totalorder %s134_s23, %s134_s23 }
   0x8   :  { %vm70_vm6 = vcmp.lt.s32.totalorder %v18_v6, 16  ;;  %vm86_vm7 = vcmp.lt.s32.totalorder %v18_v6, 112 }
   0x9   :  { %v31_v9 = vand.u32 15, %v19_v7  ;;  %vm44_vm2 = vcmp.eq.s32.totalorder %v24_v8, 0  ;;  %vm55_vm4 = vcmp.eq.s32.totalorder %v24_v8, 15  ;;  %vm81_vm8 = vcmp.ge.s32.totalorder %v19_v7, 240  ;;  %p141_p3 = por %p140_p2, %p139_p1 }
   0xa   :  { %99 = vperm.xlu0 %133, %v95_v3  }
   0xb   :  { %vm45_vm3 = vcmp.eq.s32.totalorder %v31_v9, 0  ;;  %vm56_vm5 = vcmp.eq.s32.totalorder %v31_v9, 15  ;;  %p142_p4 = pnand %p141_p3, %p135_p0 }
   0xe   :  { %106 = vperm.xlu0 %133, %v96_v4  }
  0x74   :  { %v58_v10 = vpop.permute.xlu1 %57  ;;  %v47_v11 = vpop.permute.xlu0 %46 }
  0x78   :  { %v60_v12 = vpop.permute.xlu1 %59  ;;  %v49_v13 = vpop.permute.xlu0 %48 }
  0x79   :  { %v62_v14 = vsel %vm61_vm0, %v58_v10, %v60_v12  ;;  %v63_v15 = vsel %vm61_vm0, %v60_v12, %v58_v10  ;;  %v51_v16 = vsel %vm50_vm1, %v47_v11, %v49_v13  ;;  %v52_v17 = vsel %vm50_vm1, %v49_v13, %v47_v11 }
  0x7a   :  { %v53_v18 = vsel %vm44_vm2, 0.0, %v52_v17  ;;  %v54_v19 = vsel %vm45_vm3, 0.0, %v51_v16  ;;  %v64_v22 = vsel %vm55_vm4, 0.0, %v62_v14  ;;  %v65_v23 = vsel %vm56_vm5, 0.0, %v63_v15 }
  0x7b   :  { %v66_v20 = vadd.f32 %v53_v18, %v15_v0  ;;  %v67_v21 = vadd.f32 %v54_v19, %v16_v1 }
  0x7d   :  { %v68_v24 = vadd.f32 %v66_v20, %v64_v22  ;;  %v69_v25 = vadd.f32 %v67_v21, %v65_v23 }
  0x7f   :  { %72 = vrot.lane.b32.xlu1 %v68_v24, %s161_s0  ;;  %84 = vrot.lane.b32.xlu0 %v69_v25, %s162_s1 }
  0x83   :  { %74 = vrot.lane.b32.xlu1 %v69_v25, %s161_s0 }
  0x87   :  { %82 = vrot.lane.b32.xlu1 %v68_v24, %s162_s1 }
  0x89   :  { %v100_v26 = vpop.permute.xlu0 %99 }
  0x8d   :  { %v107_v28 = vpop.permute.xlu0 %106 }
  0xf1   :  { %v73_v27 = vpop.permute.xlu1 %72  ;;  %v85_v34 = vpop.permute.xlu0 %84 }
  0xf5   :  { %v75_v29 = vpop.permute.xlu1 %74 }
  0xf6   :  { %v77_v30 = vsel %vm70_vm6, %v75_v29, %v73_v27  ;;  %v76_v31 = vsel %vm70_vm6, %v73_v27, %v75_v29 }
  0xf7   :  { %v78_v32 = vsel %vm70_vm6, 0.0, %v77_v30  ;;  %v92_v36 = vadd.f32 %v76_v31, %v69_v25 }
  0xf8   :  { %v91_v33 = vadd.f32 %v78_v32, %v68_v24 }
  0xf9   :  { %v83_v35 = vpop.permute.xlu1 %82 }
  0xfa   :  { %v87_v37 = vsel %vm86_vm7, %v83_v35, %v85_v34  ;;  %v88_v38 = vsel %vm86_vm7, %v85_v34, %v83_v35 }
  0xfb   :  { %v90_v39 = vsel %vm81_vm8, 0.0, %v88_v38  ;;  %v93_v40 = vadd.f32 %v91_v33, %v87_v37 }
  0xfc   :  { %v94_v41 = vadd.f32 %v92_v36, %v90_v39 }
  0xfd   :  { %v102_v42 = vmul.f32 %v100_v26, %v93_v40 }
  0xfe   :  { %v103_v43 = vmul.f32 %v100_v26, %v94_v41 }
  0xff   :  { %v109_v44 = vadd.f32 %v107_v28, %v102_v42 }
 0x100   :  { %v110_v45 = vadd.f32 %v107_v28, %v103_v43 }
 0x101   :  { %111 = vst [vmem:[#allocation2] sm:$0xff] %v109_v44 }
 0x102   :  { %112 = vst [vmem:[#allocation2 + $0x8] sm:$0xff] %v110_v45 }
 0x103   :  { %145 = shalt.err (!%p142_p4)
}
 0x104   :  { %s146_s26 = scalar_lea.hbm %s211_s3, 256 }
 0x105   :  { %p147_p5 = scmp.ne.s32.totalorder %s211_s3, %s146_s26  ;;  %p150_p6 = scmp.lt.u32.totalorder %s146_s26, %s211_s3 }
 0x107   :  { %p152_p7 = pnand %p150_p6, %p147_p5 }
 0x109   :  { %155 = shalt.err (!%p152_p7)
}
 0x10a   :  { %122 = dma.vmem_to_hbm [thread:$0]  %s120_s22, 256, %s211_s3, [#allocation3]  }
 0x10b   :  { %156 = dma.done.wait [#allocation3], 256  }
 0x10c   :  { %157 = vsyncadd [#allocation3], 4294967040 }
 0x10d   :  { %126 = vsyncpa [#allocation3], 1 }

</bundles_post_ra>
